<compile_context>
chip_gen: v6e
topology: v6e:2x2x1
jax: 0.10.0
libtpu: 0.0.40
codegen_flags: <defaults>
</compile_context>

<pallas_src>
import functools

import jax
import jax.numpy as jnp
from jax.experimental import pallas as pl
from jax.experimental.pallas import tpu as pltpu


H1 = 256          # first hidden width
H2 = 64           # second hidden width (as in the PyTorch module)
H2_PAD = 128      # zero-padded to a full lane width for dense vregs
NEG_SLOPE = 0.01  # nn.LeakyReLU() default negative_slope


def _round_up(x, m):
    return (x + m - 1) // m * m


def _leaky_relu(x, slope=NEG_SLOPE):
    return jnp.where(x > 0, x, slope * x)


def discriminator_kernel(x_ref, w1_ref, b1_ref, w2_ref, b2_ref, w3_ref, b3_ref, o_ref):
    # x tile: (TM, D) bf16; weights/biases are resident across the batch grid.
    x = x_ref[...]

    # Layer 1: bf16 MXU matmul, f32 accumulation; bias + activation in f32.
    h = jnp.dot(x, w1_ref[...], preferred_element_type=jnp.float32) + b1_ref[...]
    h = _leaky_relu(h)

    # Layer 2 (zero-padded to 128 lanes): bf16 operands, f32 accumulation.
    h = jnp.dot(h.astype(jnp.bfloat16), w2_ref[...],
                preferred_element_type=jnp.float32) + b2_ref[...]
    h = _leaky_relu(h)

    # Layer 3 (out_features == 1): degenerate-N matmul moved off the MXU onto
    # the VPU/XLU — broadcast multiply by the (padded) w3 row + lane reduction.
    logit = jnp.sum(h * w3_ref[...], axis=-1, keepdims=True) + b3_ref[...]
    o_ref[...] = jax.nn.sigmoid(logit).astype(o_ref.dtype)


def init_params(key, input_dim):
    """PyTorch nn.Linear-style init: U(-1/sqrt(fan_in), +1/sqrt(fan_in)).

    Weights stored as [in, out] (transposed w.r.t. torch's [out, in]);
    biases stored as [1, out].
    """
    dims = [(input_dim, H1), (H1, H2), (H2, 1)]
    params = []
    for fan_in, fan_out in dims:
        key, kw, kb = jax.random.split(key, 3)
        bound = 1.0 / (fan_in ** 0.5)
        w = jax.random.uniform(kw, (fan_in, fan_out), jnp.float32, -bound, bound)
        b = jax.random.uniform(kb, (1, fan_out), jnp.float32, -bound, bound)
        params += [w, b]
    return tuple(params)


def pack_params(params):
    """Raw f32 [in,out] params -> kernel-ready params.

    - w1, w2 cast to bf16 (MXU-native; f32 accumulation happens in-kernel).
    - layer-2 width zero-padded 64 -> 128 (zeros preserve numerics exactly).
    - w3 stored as a zero-padded (1, 128) f32 row for the VPU reduction.
    """
    w1, b1, w2, b2, w3, b3 = params
    w2p = jnp.pad(w2, ((0, 0), (0, H2_PAD - H2)))
    b2p = jnp.pad(b2, ((0, 0), (0, H2_PAD - H2)))
    w3row = jnp.pad(w3.reshape(1, H2), ((0, 0), (0, H2_PAD - H2)))
    return (w1.astype(jnp.bfloat16), b1.astype(jnp.float32),
            w2p.astype(jnp.bfloat16), b2p.astype(jnp.float32),
            w3row.astype(jnp.float32), b3.astype(jnp.float32))


@functools.partial(jax.jit, static_argnames=("tm",))
def discriminator_forward(x, packed_params, tm=1024):
    """x: [B, input_dim] float32 -> [B, 1] float32."""
    w1, b1, w2, b2, w3, b3 = packed_params
    B, D = x.shape

    # Largest batch tile <= tm; multiple of 16 so bf16 sublane packing is natural.
    TM = min(tm, _round_up(B, 16))
    B_pad = _round_up(B, TM)
    if B_pad != B:
        x = jnp.pad(x, ((0, B_pad - B), (0, 0)))
    x = x.astype(jnp.bfloat16)          # halves HBM bytes of the activation stream

    grid = (pl.cdiv(B_pad, TM),)
    const = lambda i: (0, 0)            # weights/biases: fetched once, stay resident

    out = pl.pallas_call(
        discriminator_kernel,
        out_shape=jax.ShapeDtypeStruct((B_pad, 1), jnp.float32),
        grid=grid,
        in_specs=[
            pl.BlockSpec((TM, D), lambda i: (i, 0)),       # activation tile (pipelined)
            pl.BlockSpec(w1.shape, const),
            pl.BlockSpec(b1.shape, const),
            pl.BlockSpec(w2.shape, const),
            pl.BlockSpec(b2.shape, const),
            pl.BlockSpec(w3.shape, const),
            pl.BlockSpec(b3.shape, const),
        ],
        out_specs=pl.BlockSpec((TM, 1), lambda i: (i, 0)),
        compiler_params=pltpu.CompilerParams(
            dimension_semantics=("parallel",)),            # v7x: shard batch over both TCs
    )(x, w1, b1, w2, b2, w3, b3)

    return out[:B]


def reference_forward(x, params):
    """Pure-JAX f32 reference matching the PyTorch module semantics."""
    w1, b1, w2, b2, w3, b3 = params
    h = _leaky_relu(x @ w1 + b1)
    h = _leaky_relu(h @ w2 + b2)
    return jax.nn.sigmoid(h @ w3 + b3)


if __name__ == "__main__":
    key = jax.random.PRNGKey(0)
    kx, kp = jax.random.split(key)

    batch, input_dim = 60, 32           # small, non-multiple-of-tile batch
    x = jax.random.normal(kx, (batch, input_dim), jnp.float32)
    params = init_params(kp, input_dim)
    packed = pack_params(params)

    # Single-tile path (TM = padded batch).
    out = jax.block_until_ready(discriminator_forward(x, packed))
    ref = reference_forward(x, params)

    assert out.shape == (batch, 1)
    assert bool(jnp.all(jnp.isfinite(out)))
    # bf16 matmul operands with f32 accumulation vs f32 reference: loose-ish tol.
    assert float(jnp.max(jnp.abs(out - ref))) < 2e-2

    # Multi-tile grid path (grid=4, exercises pipelined tiles + batch padding).
    out_tiled = jax.block_until_ready(discriminator_forward(x, packed, tm=16))
    assert out_tiled.shape == (batch, 1)
    assert float(jnp.max(jnp.abs(out_tiled - ref))) < 2e-2

    print("KERNEL_OK")
</pallas_src>

<mosaic_0001>
module attributes {stable_mosaic.version = 11 : i64} {
  func.func @discriminator_kernel(%arg0: i32, %arg1: memref<64x32xbf16, #tpu.memory_space<vmem>>, %arg2: memref<32x256xbf16, #tpu.memory_space<vmem>>, %arg3: memref<1x256xf32, #tpu.memory_space<vmem>>, %arg4: memref<256x128xbf16, #tpu.memory_space<vmem>>, %arg5: memref<1x128xf32, #tpu.memory_space<vmem>>, %arg6: memref<1x128xf32, #tpu.memory_space<vmem>>, %arg7: memref<1x1xf32, #tpu.memory_space<vmem>>, %arg8: memref<64x1xf32, #tpu.memory_space<vmem>>) attributes {dimension_semantics = [#tpu.dimension_semantics<parallel>], iteration_bounds = array<i64: 1>, scalar_prefetch = 0 : i64, scratch_operands = 0 : i64, tpu.core_type = #tpu.core_type<tc>, window_params = [{transform_indices = @transform_0, window_bounds = array<i64: 64, 32>}, {pipeline_mode = #tpu.pipeline_mode<synchronous>, transform_indices = @transform_1, window_bounds = array<i64: 32, 256>}, {pipeline_mode = #tpu.pipeline_mode<synchronous>, transform_indices = @transform_2, window_bounds = array<i64: 1, 256>}, {pipeline_mode = #tpu.pipeline_mode<synchronous>, transform_indices = @transform_3, window_bounds = array<i64: 256, 128>}, {pipeline_mode = #tpu.pipeline_mode<synchronous>, transform_indices = @transform_4, window_bounds = array<i64: 1, 128>}, {pipeline_mode = #tpu.pipeline_mode<synchronous>, transform_indices = @transform_5, window_bounds = array<i64: 1, 128>}, {pipeline_mode = #tpu.pipeline_mode<synchronous>, transform_indices = @transform_6, window_bounds = array<i64: 1, 1>}, {transform_indices = @transform_7, window_bounds = array<i64: 64, 1>}]} {
    %c0 = arith.constant 0 : index
    %c0_0 = arith.constant 0 : index
    %0 = vector.load %arg1[%c0, %c0_0] : memref<64x32xbf16, #tpu.memory_space<vmem>>, vector<64x32xbf16>
    %c0_1 = arith.constant 0 : index
    %c0_2 = arith.constant 0 : index
    %1 = vector.load %arg2[%c0_1, %c0_2] : memref<32x256xbf16, #tpu.memory_space<vmem>>, vector<32x256xbf16>
    %cst = arith.constant dense<0.000000e+00> : vector<64x256xf32>
    %2 = tpu.matmul %0, %1, %cst {dimension_numbers = #tpu.dot_dimension_numbers<[1], [0], [0], [1], [0, 0, 1, 1], [], []>} : vector<64x32xbf16>, vector<32x256xbf16>, vector<64x256xf32> -> vector<64x256xf32>
    %c0_3 = arith.constant 0 : index
    %c0_4 = arith.constant 0 : index
    %3 = vector.load %arg3[%c0_3, %c0_4] : memref<1x256xf32, #tpu.memory_space<vmem>>, vector<1x256xf32>
    %4 = vector.broadcast %3 : vector<1x256xf32> to vector<64x256xf32>
    %5 = arith.addf %2, %4 : vector<64x256xf32>
    %cst_5 = arith.constant 0.000000e+00 : f32
    %6 = vector.broadcast %cst_5 : f32 to vector<64x256xf32>
    %7 = arith.cmpf ogt, %5, %6 : vector<64x256xf32>
    %cst_6 = arith.constant 0.00999999977 : f32
    %8 = vector.broadcast %cst_6 : f32 to vector<64x256xf32>
    %9 = arith.mulf %8, %5 : vector<64x256xf32>
    %10 = arith.select %7, %5, %9 : vector<64x256xi1>, vector<64x256xf32>
    %11 = arith.truncf %10 : vector<64x256xf32> to vector<64x256xbf16>
    %c0_7 = arith.constant 0 : index
    %c0_8 = arith.constant 0 : index
    %12 = vector.load %arg4[%c0_7, %c0_8] : memref<256x128xbf16, #tpu.memory_space<vmem>>, vector<256x128xbf16>
    %cst_9 = arith.constant dense<0.000000e+00> : vector<64x128xf32>
    %13 = tpu.matmul %11, %12, %cst_9 {dimension_numbers = #tpu.dot_dimension_numbers<[1], [0], [0], [1], [0, 0, 1, 1], [], []>} : vector<64x256xbf16>, vector<256x128xbf16>, vector<64x128xf32> -> vector<64x128xf32>
    %c0_10 = arith.constant 0 : index
    %c0_11 = arith.constant 0 : index
    %14 = vector.load %arg5[%c0_10, %c0_11] : memref<1x128xf32, #tpu.memory_space<vmem>>, vector<1x128xf32>
    %15 = vector.broadcast %14 : vector<1x128xf32> to vector<64x128xf32>
    %16 = arith.addf %13, %15 : vector<64x128xf32>
    %cst_12 = arith.constant 0.000000e+00 : f32
    %17 = vector.broadcast %cst_12 : f32 to vector<64x128xf32>
    %18 = arith.cmpf ogt, %16, %17 : vector<64x128xf32>
    %cst_13 = arith.constant 0.00999999977 : f32
    %19 = vector.broadcast %cst_13 : f32 to vector<64x128xf32>
    %20 = arith.mulf %19, %16 : vector<64x128xf32>
    %21 = arith.select %18, %16, %20 : vector<64x128xi1>, vector<64x128xf32>
    %c0_14 = arith.constant 0 : index
    %c0_15 = arith.constant 0 : index
    %22 = vector.load %arg6[%c0_14, %c0_15] : memref<1x128xf32, #tpu.memory_space<vmem>>, vector<1x128xf32>
    %23 = vector.broadcast %22 : vector<1x128xf32> to vector<64x128xf32>
    %24 = arith.mulf %21, %23 : vector<64x128xf32>
    %cst_16 = arith.constant dense<0.000000e+00> : vector<64xf32>
    %25 = vector.multi_reduction <add>, %24, %cst_16 [1] : vector<64x128xf32> to vector<64xf32>
    %26 = vector.shape_cast %25 : vector<64xf32> to vector<64x1xf32>
    %c0_17 = arith.constant 0 : index
    %c0_18 = arith.constant 0 : index
    %27 = vector.load %arg7[%c0_17, %c0_18] : memref<1x1xf32, #tpu.memory_space<vmem>>, vector<1x1xf32>
    %28 = vector.broadcast %27 : vector<1x1xf32> to vector<64x1xf32>
    %29 = arith.addf %26, %28 : vector<64x1xf32>
    %30 = arith.negf %29 : vector<64x1xf32>
    %31 = math.exp %30 : vector<64x1xf32>
    %cst_19 = arith.constant 1.000000e+00 : f32
    %32 = vector.broadcast %cst_19 : f32 to vector<64x1xf32>
    %33 = arith.addf %32, %31 : vector<64x1xf32>
    %34 = arith.divf %32, %33 : vector<64x1xf32>
    %c0_20 = arith.constant 0 : index
    %c0_21 = arith.constant 0 : index
    %35 = vector.load %arg8[%c0_20, %c0_21] : memref<64x1xf32, #tpu.memory_space<vmem>>, vector<64x1xf32>
    tpu.vector_store %arg8[%c0_20, %c0_21], %34 {strides = array<i32>} : memref<64x1xf32, #tpu.memory_space<vmem>>, vector<64x1xf32>,
    return
  }
  func.func @transform_0(%arg0: i32) -> (i32, i32) {
    %c0_i32 = arith.constant 0 : i32
    %c0_i32_0 = arith.constant 0 : i32
    return %arg0, %c0_i32 : i32, i32
  }
  func.func @transform_1(%arg0: i32) -> (i32, i32) {
    %c0_i32 = arith.constant 0 : i32
    %c0_i32_0 = arith.constant 0 : i32
    %c0_i32_1 = arith.constant 0 : i32
    return %c0_i32, %c0_i32_0 : i32, i32
  }
  func.func @transform_2(%arg0: i32) -> (i32, i32) {
    %c0_i32 = arith.constant 0 : i32
    %c0_i32_0 = arith.constant 0 : i32
    %c0_i32_1 = arith.constant 0 : i32
    return %c0_i32, %c0_i32_0 : i32, i32
  }
  func.func @transform_3(%arg0: i32) -> (i32, i32) {
    %c0_i32 = arith.constant 0 : i32
    %c0_i32_0 = arith.constant 0 : i32
    %c0_i32_1 = arith.constant 0 : i32
    return %c0_i32, %c0_i32_0 : i32, i32
  }
  func.func @transform_4(%arg0: i32) -> (i32, i32) {
    %c0_i32 = arith.constant 0 : i32
    %c0_i32_0 = arith.constant 0 : i32
    %c0_i32_1 = arith.constant 0 : i32
    return %c0_i32, %c0_i32_0 : i32, i32
  }
  func.func @transform_5(%arg0: i32) -> (i32, i32) {
    %c0_i32 = arith.constant 0 : i32
    %c0_i32_0 = arith.constant 0 : i32
    %c0_i32_1 = arith.constant 0 : i32
    return %c0_i32, %c0_i32_0 : i32, i32
  }
  func.func @transform_6(%arg0: i32) -> (i32, i32) {
    %c0_i32 = arith.constant 0 : i32
    %c0_i32_0 = arith.constant 0 : i32
    %c0_i32_1 = arith.constant 0 : i32
    return %c0_i32, %c0_i32_0 : i32, i32
  }
  func.func @transform_7(%arg0: i32) -> (i32, i32) {
    %c0_i32 = arith.constant 0 : i32
    %c0_i32_0 = arith.constant 0 : i32
    return %arg0, %c0_i32 : i32, i32
  }
}

</mosaic_0001>

<bundles_post_ra>
// kernel: discriminator_forward.1
= control target key start
LH: loop header
LB: loop body
LE: loop exit
PB: predicated region body
PF: predicated region fallthrough
CT: control target
= control target key end

     0   :  { %v720_v1 = vmov 0   ;;  %vm93_vm0 = vcmask 261120   ;;  %v43_v25 = vlaneseq  ;;  %s921_s1 = inlined_call_operand.vmem [shape: bf16[32,256], index: 1, kind: input, shape index: {}]   ;;  %s922_s0 = inlined_call_operand.vmem [shape: bf16[64,32], index: 0, kind: input, shape index: {}]   ;;  %s923_s3 = inlined_call_operand.vmem [shape: bf16[256,128], index: 3, kind: input, shape index: {}]   ;;  %s924_s2 = inlined_call_operand.vmem [shape: f32[1,256], index: 2, kind: input, shape index: {}]   ;;  %s925_s6 = inlined_call_operand.<no memory space> [shape: f32[1,1], index: 6, kind: input, shape index: {}]   ;;  %s926_s4 = inlined_call_operand.vmem [shape: f32[1,128], index: 4, kind: input, shape index: {}]   ;;  %s927_s5 = inlined_call_operand.vmem [shape: f32[1,128], index: 5, kind: input, shape index: {}]   ;;  %s928_s7 = inlined_call_operand.vmem [shape: f32[64,1], index: 7, kind: output, shape index: {}]  }
   0x1   :  { %v662_v0 = vld [vmem:[%s921_s1 + $0x14] ss:$8 sps:$4 sm:$0xff]   ;;  %138 = vmatprep.mubr.bf16.mxu0 %v720_v1  ;;  %v664_v2 = vld [vmem:[%s921_s1 + $0x10] ss:$8 sps:$4 sm:$0xff]   ;;  %v665_v3 = vld [vmem:[%s921_s1 + $0x4] ss:$8 sps:$4 sm:$0xff]  }
   0x2   :  { %118 = vmatprep.subr.bf16.mxu0 %v662_v0  ;;  %v667_v4 = vld [vmem:[%s921_s1] ss:$8 sps:$4 sm:$0xff]   ;;  %v672_v6 = vld [vmem:[%s923_s3 + $0x78] sm:$0xff]   ;;  %v674_v8 = vld [vmem:[%s923_s3 + $0x70] sm:$0xff]   ;;  %v44_v26 = vshrl.u32 %v43_v25, 7 }
   0x3   :  { %119 = vmatpush1.bf16.msra.mxu0 %v664_v2  ;;  %v668_v5 = vld [vmem:[%s922_s0] sm:$0xff]   ;;  %v673_v7 = vld [vmem:[%s923_s3 + $0x38] sm:$0xff]   ;;  %645 = vmatprep.subr.bf16.mxu1 %v672_v6  ;;  %v675_v9 = vld [vmem:[%s923_s3 + $0x30] sm:$0xff]  }
   0x4   :  { %120 = vmatprep.subr.bf16.mxu0 %v665_v3  ;;  %653 = vmatpush3.bf16.msra.mxu1 %v673_v7  ;;  %v676_v10 = vld [vmem:[%s923_s3 + $0x68] sm:$0xff]   ;;  %v678_v13 = vld [vmem:[%s923_s3 + $0x60] sm:$0xff]   ;;  %v680_v15 = vld [vmem:[%s923_s3 + $0x58] sm:$0xff]   ;;  %v49_v27 = vsub.s32 1, %v44_v26  ;;  %v45_v28 = vsub.s32 0, %v44_v26 }
   0x5   :  { %646 = vmatprep.subr.bf16.mxu1 %v674_v8  ;;  %v669_v11 = vld [vmem:[%s922_s0 + $0x8] sm:$0xff]   ;;  %v679_v14 = vld [vmem:[%s923_s3 + $0x20] sm:$0xff]   ;;  %v670_v16 = vld [vmem:[%s922_s0 + $0x10] sm:$0xff]  }
   0x6   :  { %v677_v12 = vld [vmem:[%s923_s3 + $0x28] sm:$0xff]   ;;  %v671_v17 = vld [vmem:[%s922_s0 + $0x18] sm:$0xff]   ;;  %v682_v19 = vld [vmem:[%s923_s3 + $0x50] sm:$0xff]  }
   0x7   :  { %121 = vmatpush1.bf16.msra.mxu0 %v667_v4  ;;  %v681_v18 = vld [vmem:[%s923_s3 + $0x18] sm:$0xff]   ;;  %v683_v20 = vld [vmem:[%s923_s3 + $0x10] sm:$0xff]   ;;  %v684_v21 = vld [vmem:[%s923_s3 + $0x48] sm:$0xff]  }
   0x8   :  { %605 = vmatprep.subr.bf16.mxu0 %v672_v6  ;;  %654 = vmatpush3.bf16.msra.mxu1 %v675_v9  ;;  %v685_v22 = vld [vmem:[%s923_s3 + $0x8] sm:$0xff]   ;;  %v686_v23 = vld [vmem:[%s923_s3 + $0x40] sm:$0xff]  }
   0x9   :  { %647 = vmatprep.subr.bf16.mxu1 %v676_v10  ;;  %v687_v24 = vld [vmem:[%s923_s3] sm:$0xff]  }
   0xa   :  { %574 = vmatmul.mubr.msk.bf16.vlgmr.msra.gmra.mxu0 %vm93_vm0, %v668_v5  ;;  %v41_v29 = vld [vmem:[%s924_s2] sm:$0x3] }
   0xb   :  { %148 = vmatprep.mubr.bf16.mxu0 %v720_v1  ;;  %606 = vmatpush3.bf16.msra.mxu0 %v673_v7  ;;  %v840_v30 = vrot.slane %v41_v29, %v49_v27  ;;  %v842_v31 = vrot.slane %v41_v29, %v45_v28 }
   0xc   :  { %607 = vmatprep.subr.bf16.mxu0 %v674_v8  ;;  %655 = vmatpush3.bf16.msra.mxu1 %v677_v12 }
   0xd   :  { %648 = vmatprep.subr.bf16.mxu1 %v678_v13 }
   0xf   :  { %608 = vmatpush3.bf16.msra.mxu0 %v675_v9 }
  0x10   :  { %609 = vmatprep.subr.bf16.mxu0 %v676_v10  ;;  %656 = vmatpush3.bf16.msra.mxu1 %v679_v14 }
  0x11   :  { %649 = vmatprep.subr.bf16.mxu1 %v680_v15 }
  0x12   :  { %575 = vmatmul.mubr.msk.bf16.gmra.mxu0 %vm93_vm0, %v669_v11 }
  0x13   :  { %158 = vmatprep.mubr.bf16.mxu0 %v720_v1  ;;  %610 = vmatpush3.bf16.msra.mxu0 %v677_v12 }
  0x14   :  { %611 = vmatprep.subr.bf16.mxu0 %v678_v13  ;;  %657 = vmatpush3.bf16.msra.mxu1 %v681_v18 }
  0x15   :  { %650 = vmatprep.subr.bf16.mxu1 %v682_v19 }
  0x17   :  { %612 = vmatpush3.bf16.msra.mxu0 %v679_v14 }
  0x18   :  { %613 = vmatprep.subr.bf16.mxu0 %v680_v15  ;;  %658 = vmatpush3.bf16.msra.mxu1 %v683_v20 }
  0x19   :  { %651 = vmatprep.subr.bf16.mxu1 %v684_v21 }
  0x1a   :  { %576 = vmatmul.mubr.msk.bf16.gmra.mxu0 %vm93_vm0, %v670_v16 }
  0x1b   :  { %168 = vmatprep.mubr.bf16.mxu0 %v720_v1  ;;  %614 = vmatpush3.bf16.msra.mxu0 %v681_v18 }
  0x1c   :  { %615 = vmatprep.subr.bf16.mxu0 %v682_v19  ;;  %659 = vmatpush3.bf16.msra.mxu1 %v685_v22 }
  0x1d   :  { %652 = vmatprep.subr.bf16.mxu1 %v686_v23 }
  0x1f   :  { %616 = vmatpush3.bf16.msra.mxu0 %v683_v20 }
  0x20   :  { %617 = vmatprep.subr.bf16.mxu0 %v684_v21  ;;  %660 = vmatpush3.bf16.msra.mxu1 %v687_v24 }
  0x22   :  { %577 = vmatmul.mubr.msk.bf16.gmra.mxu0 %vm93_vm0, %v671_v17 }
  0x23   :  { %618 = vmatpush3.bf16.msra.mxu0 %v685_v22 }
  0x24   :  { %619 = vmatprep.subr.bf16.mxu0 %v686_v23 }
  0x27   :  { %620 = vmatpush3.bf16.msra.mxu0 %v687_v24 }
  0xca   :  { %v140_v32 = vpop.f32.mrf.mxu0 }
  0xcb   :  { %v141_v35 = vadd.f32 %v140_v32, %v842_v31 }
  0xcc   :  { %v142_v33 = vpop.f32.mrf.mxu0 }
  0xcd   :  { %v143_v34 = vadd.f32 %v142_v33, %v840_v30  ;;  %v195_v42 = vmul.f32 0.01, %v141_v35  ;;  %vm179_vm3 = vcmp.gt.f32.partialorder %v141_v35, 0.0 }
  0xce   :  { %v144_v36 = vpop.f32.mrf.mxu0 }
  0xcf   :  { %v145_v37 = vadd.f32 %v144_v36, %v842_v31  ;;  %v196_v39 = vmul.f32 0.01, %v143_v34  ;;  %vm180_vm2 = vcmp.gt.f32.partialorder %v143_v34, 0.0  ;;  %v211_v50 = vsel %vm179_vm3, %v141_v35, %v195_v42  ;;  %v866_v42 = vld [vmem:[%s926_s4] ss:$0 sm:$0xff] }
  0xd0   :  { %v146_v38 = vpop.f32.mrf.mxu0 }
  0xd1   :  { %vm181_vm1 = vcmp.gt.f32.partialorder %v145_v37, 0.0  ;;  %v197_v40 = vmul.f32 0.01, %v145_v37  ;;  %v147_v41 = vadd.f32 %v146_v38, %v840_v30  ;;  %v212_v48 = vsel %vm180_vm2, %v143_v34, %v196_v39 }
  0xd2   :  { %v150_v43 = vpop.f32.mrf.mxu0 }
  0xd3   :  { %vm182_vm4 = vcmp.gt.f32.partialorder %v147_v41, 0.0  ;;  %v198_v44 = vmul.f32 0.01, %v147_v41  ;;  %v213_v45 = vsel %vm181_vm1, %v145_v37, %v197_v40  ;;  %v151_v51 = vadd.f32 %v150_v43, %v842_v31 }
  0xd4   :  { %v152_v46 = vpop.f32.mrf.mxu0  ;;  %v227_v54 = vpack.c.bf16 %v213_v45, %v211_v50  ;;  %v872_v50 = vld [vmem:[%s927_s5] ss:$0 sm:$0xff] }
  0xd5   :  { %v153_v47 = vadd.f32 %v152_v46, %v840_v30  ;;  %v214_v49 = vsel %vm182_vm4, %v147_v41, %v198_v44  ;;  %v199_v60 = vmul.f32 0.01, %v151_v51  ;;  %vm183_vm7 = vcmp.gt.f32.partialorder %v151_v51, 0.0 }
  0xd6   :  { %v154_v52 = vpop.f32.mrf.mxu0  ;;  %v228_v53 = vpack.c.bf16 %v214_v49, %v212_v48  ;;  %v12_v41 = vstv %s925_s6 }
  0xd7   :  { %v155_v55 = vadd.f32 %v154_v52, %v842_v31  ;;  %v200_v57 = vmul.f32 0.01, %v153_v47  ;;  %vm184_vm6 = vcmp.gt.f32.partialorder %v153_v47, 0.0  ;;  %v215_v7 = vsel %vm183_vm7, %v151_v51, %v199_v60  ;;  %13 = vst [vmem:[#allocation2] sm:$0x1] %v12_v41 }
  0xd8   :  { %v156_v56 = vpop.f32.mrf.mxu0  ;;  %402 = vmatprep.mubr.bf16.mxu0 %v228_v53 }
  0xd9   :  { %vm185_vm5 = vcmp.gt.f32.partialorder %v155_v55, 0.0  ;;  %v201_v58 = vmul.f32 0.01, %v155_v55  ;;  %v157_v59 = vadd.f32 %v156_v56, %v840_v30  ;;  %403 = vmatmul.mubr.bf16.vlgmr.msra.gmra.mxu0 %v227_v54  ;;  %v216_v2 = vsel %vm184_vm6, %v153_v47, %v200_v57 }
  0xda   :  { %v160_v61 = vpop.f32.mrf.mxu0 }
  0xdb   :  { %v202_v62 = vmul.f32 0.01, %v157_v59  ;;  %vm186_vm8 = vcmp.gt.f32.partialorder %v157_v59, 0.0  ;;  %v217_v0 = vsel %vm185_vm5, %v155_v55, %v201_v58  ;;  %v161_v4 = vadd.f32 %v160_v61, %v842_v31 }
  0xdc   :  { %v162_v63 = vpop.f32.mrf.mxu0  ;;  %v229_v9 = vpack.c.bf16 %v217_v0, %v215_v7 }
  0xdd   :  { %v163_v1 = vadd.f32 %v162_v63, %v840_v30  ;;  %v218_v3 = vsel %vm186_vm8, %v157_v59, %v202_v62  ;;  %v203_v14 = vmul.f32 0.01, %v161_v4  ;;  %vm187_vm11 = vcmp.gt.f32.partialorder %v161_v4, 0.0 }
  0xde   :  { %v164_v5 = vpop.f32.mrf.mxu0  ;;  %v230_v6 = vpack.c.bf16 %v218_v3, %v216_v2 }
  0xdf   :  { %v165_v8 = vadd.f32 %v164_v5, %v842_v31  ;;  %v204_v11 = vmul.f32 0.01, %v163_v1  ;;  %vm188_vm10 = vcmp.gt.f32.partialorder %v163_v1, 0.0  ;;  %v219_v25 = vsel %vm187_vm11, %v161_v4, %v203_v14 }
  0xe0   :  { %v166_v10 = vpop.f32.mrf.mxu0  ;;  %410 = vmatprep.mubr.bf16.mxu1 %v230_v6 }
  0xe1   :  { %vm189_vm9 = vcmp.gt.f32.partialorder %v165_v8, 0.0  ;;  %v205_v12 = vmul.f32 0.01, %v165_v8  ;;  %v167_v13 = vadd.f32 %v166_v10, %v840_v30  ;;  %411 = vmatmul.mubr.bf16.vlgmr.msra.gmra.mxu1 %v229_v9  ;;  %v220_v20 = vsel %vm188_vm10, %v163_v1, %v204_v11 }
  0xe2   :  { %v170_v15 = vpop.f32.mrf.mxu0 }
  0xe3   :  { %vm190_vm12 = vcmp.gt.f32.partialorder %v167_v13, 0.0  ;;  %v206_v16 = vmul.f32 0.01, %v167_v13  ;;  %v221_v18 = vsel %vm189_vm9, %v165_v8, %v205_v12  ;;  %v171_v22 = vadd.f32 %v170_v15, %v842_v31 }
  0xe4   :  { %v172_v17 = vpop.f32.mrf.mxu0  ;;  %v231_v27 = vpack.c.bf16 %v221_v18, %v219_v25  ;;  %vm553_vm9 = vcmask 7168  }
  0xe5   :  { %v173_v19 = vadd.f32 %v172_v17, %v840_v30  ;;  %v222_v21 = vsel %vm190_vm12, %v167_v13, %v206_v16  ;;  %v207_v34 = vmul.f32 0.01, %v171_v22  ;;  %vm191_vm15 = vcmp.gt.f32.partialorder %v171_v22, 0.0 }
  0xe6   :  { %v174_v23 = vpop.f32.mrf.mxu0  ;;  %v232_v24 = vpack.c.bf16 %v222_v21, %v220_v20 }
  0xe7   :  { %v175_v26 = vadd.f32 %v174_v23, %v842_v31  ;;  %v208_v29 = vmul.f32 0.01, %v173_v19  ;;  %vm192_vm14 = vcmp.gt.f32.partialorder %v173_v19, 0.0  ;;  %v223_v40 = vsel %vm191_vm15, %v171_v22, %v207_v34 }
  0xe8   :  { %v176_v28 = vpop.f32.mrf.mxu0  ;;  %418 = vmatprep.mubr.bf16.mxu1 %v232_v24 }
  0xe9   :  { %vm193_vm13 = vcmp.gt.f32.partialorder %v175_v26, 0.0  ;;  %v209_v32 = vmul.f32 0.01, %v175_v26  ;;  %v177_v33 = vadd.f32 %v176_v28, %v840_v30  ;;  %419 = vmatmul.mubr.bf16.gmra.mxu1 %v231_v27  ;;  %v224_v37 = vsel %vm192_vm14, %v173_v19, %v208_v29 }
  0xeb   :  { %vm194_vm0 = vcmp.gt.f32.partialorder %v177_v33, 0.0  ;;  %v210_v35 = vmul.f32 0.01, %v177_v33  ;;  %v225_v36 = vsel %vm193_vm13, %v175_v26, %v209_v32 }
  0xec   :  { %v233_v31 = vpack.c.bf16 %v225_v36, %v223_v40 }
  0xed   :  { %v226_v38 = vsel %vm194_vm0, %v177_v33, %v210_v35 }
  0xee   :  { %v234_v39 = vpack.c.bf16 %v226_v38, %v224_v37  ;;  %v596_v37 = vld [vmem:[#allocation2] ss:$0 sm:$0xff] }
  0xf0   :  { %426 = vmatprep.mubr.bf16.mxu1 %v234_v39 }
  0xf1   :  { %427 = vmatmul.mubr.bf16.gmra.mxu1 %v233_v31 }
 0x199   :  { %v621_v30 = vpop.f32.mrf.mxu0 }
 0x19b   :  { %v622_v43 = vpop.f32.mrf.mxu0 }
 0x19c   :  { %v623_v44 = vadd.f32 %v622_v43, %v621_v30 }
 0x19d   :  { %v624_v45 = vpop.f32.mrf.mxu0 }
 0x19e   :  { %v405_v46 = vadd.f32 %v623_v44, %v866_v42 }
 0x19f   :  { %v625_v47 = vpop.f32.mrf.mxu0 }
 0x1a0   :  { %v626_v48 = vadd.f32 %v625_v47, %v624_v45  ;;  %vm435_vm1 = vcmp.gt.f32.partialorder %v405_v46, 0.0  ;;  %v443_v49 = vmul.f32 0.01, %v405_v46 }
 0x1a1   :  { %v627_v51 = vpop.f32.mrf.mxu1 }
 0x1a2   :  { %v408_v52 = vadd.f32 %v626_v48, %v866_v42  ;;  %v451_v53 = vsel %vm435_vm1, %v405_v46, %v443_v49 }
 0x1a3   :  { %v628_v54 = vpop.f32.mrf.mxu1  ;;  %v466_v55 = vmul.f32 %v872_v50, %v451_v53 }
 0x1a4   :  { %v629_v56 = vadd.f32 %v628_v54, %v627_v51  ;;  %vm436_vm2 = vcmp.gt.f32.partialorder %v408_v52, 0.0  ;;  %v444_v57 = vmul.f32 0.01, %v408_v52 }
 0x1a5   :  { %v630_v58 = vpop.f32.mrf.mxu1  ;;  %474 = vadd.xlane.f32.xlu0 %v466_v55 }
 0x1a6   :  { %v413_v59 = vadd.f32 %v629_v56, %v866_v42  ;;  %v452_v60 = vsel %vm436_vm2, %v408_v52, %v444_v57 }
 0x1a7   :  { %v631_v61 = vpop.f32.mrf.mxu1  ;;  %v467_v62 = vmul.f32 %v872_v50, %v452_v60 }
 0x1a8   :  { %v632_v63 = vadd.f32 %v631_v61, %v630_v58  ;;  %vm437_vm3 = vcmp.gt.f32.partialorder %v413_v59, 0.0  ;;  %v445_v0 = vmul.f32 0.01, %v413_v59 }
 0x1a9   :  { %v633_v1 = vpop.f32.mrf.mxu1  ;;  %476 = vadd.xlane.f32.xlu0 %v467_v62 }
 0x1aa   :  { %v416_v2 = vadd.f32 %v632_v63, %v866_v42  ;;  %v453_v3 = vsel %vm437_vm3, %v413_v59, %v445_v0 }
 0x1ab   :  { %v634_v4 = vpop.f32.mrf.mxu1  ;;  %v468_v5 = vmul.f32 %v872_v50, %v453_v3 }
 0x1ac   :  { %v635_v6 = vadd.f32 %v634_v4, %v633_v1  ;;  %vm438_vm4 = vcmp.gt.f32.partialorder %v416_v2, 0.0  ;;  %v446_v7 = vmul.f32 0.01, %v416_v2 }
 0x1ad   :  { %v636_v8 = vpop.f32.mrf.mxu1  ;;  %478 = vadd.xlane.f32.xlu1 %v468_v5 }
 0x1ae   :  { %v421_v9 = vadd.f32 %v635_v6, %v866_v42  ;;  %v454_v10 = vsel %vm438_vm4, %v416_v2, %v446_v7 }
 0x1af   :  { %v637_v11 = vpop.f32.mrf.mxu1  ;;  %v469_v12 = vmul.f32 %v872_v50, %v454_v10 }
 0x1b0   :  { %v638_v13 = vadd.f32 %v637_v11, %v636_v8  ;;  %vm439_vm5 = vcmp.gt.f32.partialorder %v421_v9, 0.0  ;;  %v447_v14 = vmul.f32 0.01, %v421_v9 }
 0x1b1   :  { %v639_v15 = vpop.f32.mrf.mxu1  ;;  %480 = vadd.xlane.f32.xlu1 %v469_v12 }
 0x1b2   :  { %v424_v16 = vadd.f32 %v638_v13, %v866_v42  ;;  %v455_v17 = vsel %vm439_vm5, %v421_v9, %v447_v14 }
 0x1b3   :  { %v640_v18 = vpop.f32.mrf.mxu1  ;;  %v470_v19 = vmul.f32 %v872_v50, %v455_v17 }
 0x1b4   :  { %v641_v20 = vadd.f32 %v640_v18, %v639_v15  ;;  %vm440_vm6 = vcmp.gt.f32.partialorder %v424_v16, 0.0  ;;  %v448_v21 = vmul.f32 0.01, %v424_v16 }
 0x1b5   :  { %v642_v22 = vpop.f32.mrf.mxu1  ;;  %482 = vadd.xlane.f32.xlu0 %v470_v19 }
 0x1b6   :  { %v429_v23 = vadd.f32 %v641_v20, %v866_v42  ;;  %v456_v24 = vsel %vm440_vm6, %v424_v16, %v448_v21 }
 0x1b7   :  { %v643_v25 = vpop.f32.mrf.mxu1  ;;  %v471_v26 = vmul.f32 %v872_v50, %v456_v24 }
 0x1b8   :  { %v644_v27 = vadd.f32 %v643_v25, %v642_v22  ;;  %vm441_vm7 = vcmp.gt.f32.partialorder %v429_v23, 0.0  ;;  %v449_v28 = vmul.f32 0.01, %v429_v23 }
 0x1b9   :  { %484 = vadd.xlane.f32.xlu1 %v471_v26 }
 0x1ba   :  { %v432_v29 = vadd.f32 %v644_v27, %v866_v42  ;;  %v457_v32 = vsel %vm441_vm7, %v429_v23, %v449_v28 }
 0x1bb   :  { %v472_v33 = vmul.f32 %v872_v50, %v457_v32 }
 0x1bc   :  { %vm442_vm8 = vcmp.gt.f32.partialorder %v432_v29, 0.0  ;;  %v450_v34 = vmul.f32 0.01, %v432_v29 }
 0x1bd   :  { %486 = vadd.xlane.f32.xlu0 %v472_v33 }
 0x1be   :  { %v458_v35 = vsel %vm442_vm8, %v432_v29, %v450_v34 }
 0x1bf   :  { %v473_v36 = vmul.f32 %v872_v50, %v458_v35 }
 0x1c1   :  { %488 = vadd.xlane.f32.xlu1 %v473_v36 }
 0x22e   :  { %v475_v38 = vpop.xlane.xlu0 %474 }
 0x22f   :  { %v497_v39 = vadd.f32 %v596_v37, %v475_v38 }
 0x231   :  { %v597_v40 = vmul.f32 -1.442695, %v497_v39 }
 0x232   :  { %v477_v31 = vpop.xlane.xlu0 %476 }
 0x233   :  { %688 = vpow2.f32 %v597_v40  ;;  %v498_v41 = vadd.f32 %v596_v37, %v477_v31 }
 0x235   :  { %v598_v30 = vmul.f32 -1.442695, %v498_v41 }
 0x236   :  { %v479_v43 = vpop.xlane.xlu1 %478 }
 0x237   :  { %690 = vpow2.f32 %v598_v30  ;;  %v499_v42 = vadd.f32 %v596_v37, %v479_v43 }
 0x239   :  { %v599_v44 = vmul.f32 -1.442695, %v499_v42 }
 0x23a   :  { %v481_v45 = vpop.xlane.xlu1 %480 }
 0x23b   :  { %692 = vpow2.f32 %v599_v44  ;;  %v500_v46 = vadd.f32 %v596_v37, %v481_v45 }
 0x23d   :  { %v600_v47 = vmul.f32 -1.442695, %v500_v46 }
 0x23e   :  { %v483_v48 = vpop.xlane.xlu0 %482 }
 0x23f   :  { %694 = vpow2.f32 %v600_v47  ;;  %v501_v49 = vadd.f32 %v596_v37, %v483_v48 }
 0x240   :  { %v689_v50 = vpop.eup %688 }
 0x241   :  { %v529_v51 = vadd.f32 1.0, %v689_v50  ;;  %v601_v52 = vmul.f32 -1.442695, %v501_v49 }
 0x242   :  { %v485_v53 = vpop.xlane.xlu1 %484 }
 0x243   :  { %696 = vrcp.f32 %v529_v51  ;;  %v502_v54 = vadd.f32 %v596_v37, %v485_v53 }
 0x244   :  { %v691_v55 = vpop.eup %690  ;;  %698 = vpow2.f32 %v601_v52 }
 0x245   :  { %v530_v56 = vadd.f32 1.0, %v691_v55  ;;  %v602_v57 = vmul.f32 -1.442695, %v502_v54 }
 0x246   :  { %v487_v58 = vpop.xlane.xlu0 %486 }
 0x247   :  { %700 = vrcp.f32 %v530_v56  ;;  %v503_v59 = vadd.f32 %v596_v37, %v487_v58 }
 0x248   :  { %v693_v60 = vpop.eup %692  ;;  %702 = vpow2.f32 %v602_v57 }
 0x249   :  { %v531_v61 = vadd.f32 1.0, %v693_v60  ;;  %v603_v62 = vmul.f32 -1.442695, %v503_v59 }
 0x24a   :  { %v489_v63 = vpop.xlane.xlu1 %488 }
 0x24b   :  { %704 = vrcp.f32 %v531_v61  ;;  %v504_v0 = vadd.f32 %v596_v37, %v489_v63 }
 0x24c   :  { %v695_v1 = vpop.eup %694  ;;  %706 = vpow2.f32 %v603_v62 }
 0x24d   :  { %v532_v2 = vadd.f32 1.0, %v695_v1  ;;  %v604_v3 = vmul.f32 -1.442695, %v504_v0 }
 0x24f   :  { %708 = vrcp.f32 %v532_v2 }
 0x250   :  { %v697_v4 = vpop.eup %696  ;;  %710 = vpow2.f32 %v604_v3 }
 0x251   :  { %v699_v5 = vpop.eup %698  ;;  %554 = vst.msk [vmem:[%s928_s7] sm:$0xff] %vm553_vm9, %v697_v4 }
 0x252   :  { %v533_v6 = vadd.f32 1.0, %v699_v5 }
 0x254   :  { %v701_v7 = vpop.eup %700  ;;  %712 = vrcp.f32 %v533_v6 }
 0x255   :  { %v703_v8 = vpop.eup %702  ;;  %555 = vst.msk [vmem:[%s928_s7 + $0x8] sm:$0xff] %vm553_vm9, %v701_v7 }
 0x256   :  { %v534_v9 = vadd.f32 1.0, %v703_v8 }
 0x258   :  { %v705_v10 = vpop.eup %704  ;;  %714 = vrcp.f32 %v534_v9 }
 0x259   :  { %v707_v11 = vpop.eup %706  ;;  %556 = vst.msk [vmem:[%s928_s7 + $0x10] sm:$0xff] %vm553_vm9, %v705_v10 }
 0x25a   :  { %v535_v12 = vadd.f32 1.0, %v707_v11 }
 0x25c   :  { %v709_v13 = vpop.eup %708  ;;  %716 = vrcp.f32 %v535_v12 }
 0x25d   :  { %v711_v14 = vpop.eup %710  ;;  %557 = vst.msk [vmem:[%s928_s7 + $0x18] sm:$0xff] %vm553_vm9, %v709_v13 }
 0x25e   :  { %v536_v15 = vadd.f32 1.0, %v711_v14 }
 0x260   :  { %718 = vrcp.f32 %v536_v15 }
 0x261   :  { %v713_v16 = vpop.eup %712 }
 0x262   :  { %558 = vst.msk [vmem:[%s928_s7 + $0x20] sm:$0xff] %vm553_vm9, %v713_v16 }
 0x265   :  { %v715_v17 = vpop.eup %714 }
 0x266   :  { %559 = vst.msk [vmem:[%s928_s7 + $0x28] sm:$0xff] %vm553_vm9, %v715_v17 }
 0x269   :  { %v717_v18 = vpop.eup %716 }
 0x26a   :  { %560 = vst.msk [vmem:[%s928_s7 + $0x30] sm:$0xff] %vm553_vm9, %v717_v18 }
 0x26d   :  { %v719_v19 = vpop.eup %718 }
 0x26e   :  { %561 = vst.msk [vmem:[%s928_s7 + $0x38] sm:$0xff] %vm553_vm9, %v719_v19 }

</bundles_post_ra>
